<compile_context>
chip_gen: v5e
topology: v5e:2x2
jax: 0.10.0
libtpu: 0.0.40
codegen_flags: <defaults>
</compile_context>

<pallas_src>
import jax
import jax.numpy as jnp
from jax.experimental import pallas as pl
from jax.experimental.pallas import tpu as pltpu


def _quant_kernel(x_ref, o_ref):
    # Widen to f32 for the rounding argument (no-op when already f32).
    x = x_ref[...].astype(jnp.float32)
    # clamp AFTER the affine scale: equivalent to clamp(x,-1,1) first, and
    # (x+1)*127.5 rounds identically to ((x+1)/2)*255 (the /2 is exact).
    t = jnp.clip((x + 1.0) * 127.5, 0.0, 255.0)
    q = jnp.round(t)
    # Literal reference dequant order for bit-exact parity with the module.
    o_ref[...] = (q / 255.0 * 2.0 - 1.0).astype(o_ref.dtype)


def _quant_jnp(x: jax.Array) -> jax.Array:
    """Plain fused-XLA fallback (tiny or ragged inputs)."""
    xf = jnp.clip(x.astype(jnp.float32), -1.0, 1.0)
    q = jnp.round((xf + 1.0) / 2.0 * 255.0)
    return (q / 255.0 * 2.0 - 1.0).astype(x.dtype)


def _chip_policy():
    """(block_target_bytes, multi_tensorcore) chosen per TPU generation."""
    kind = ""
    try:
        kind = jax.devices()[0].device_kind.lower()
    except Exception:
        pass

    if "v5e" in kind or "v5 lite" in kind or "v5lite" in kind:
        block_target, multi_tc = 2 << 20, False      # 16 MiB scoped default
    elif "v6" in kind:
        block_target, multi_tc = 4 << 20, False      # 32 MiB scoped default
    elif "v7" in kind or "7x" in kind:
        block_target, multi_tc = 4 << 20, True       # 2 TCs, 64 MiB/TC physical
    else:
        block_target, multi_tc = 2 << 20, False      # conservative fallback

    # Cap by physical VMEM if queryable: (in+out) double-buffered <= ~vmem/4.
    try:
        vmem_cap = getattr(pltpu.get_tpu_info(), "vmem_capacity_bytes", None)
        if vmem_cap:
            block_target = min(block_target, max(512 << 10, vmem_cap // 16))
    except Exception:
        pass
    return block_target, multi_tc


def quantization(x: jax.Array, *,
                 min_pallas_bytes: int = 256 << 10,
                 donate_input: bool = False) -> jax.Array:
    """Elementwise fake-quantization, equivalent to Quantization.forward."""
    orig_shape = x.shape
    orig_dtype = x.dtype
    n = x.size
    itemsize = jnp.dtype(orig_dtype).itemsize
    total_bytes = n * itemsize

    # Tiny inputs: pallas_call setup cost dominates -> plain fused XLA.
    if n == 0 or total_bytes < min_pallas_bytes:
        return _quant_jnp(x)

    # Ragged sizes (rare): single-pass XLA beats any pad/slice arrangement.
    if n % 128 != 0:
        return _quant_jnp(x)

    sublane = {4: 8, 2: 16, 1: 32}.get(itemsize, 8)

    # Lane-dense last dim: widest multiple of 128 dividing n.
    lanes = 128
    for cand in (1024, 512, 256):
        if n % cand == 0:
            lanes = cand
            break
    rows = n // lanes
    x2d = x.reshape(rows, lanes)

    block_target_bytes, multi_tc = _chip_policy()

    target_rows = max(sublane, block_target_bytes // (lanes * itemsize))
    steps = pl.cdiv(rows, target_rows)
    if multi_tc and total_bytes >= (16 << 20):
        # Megacore: both TensorCores get balanced work; tiles stay >= ~2 MiB
        # because the split only triggers at >= 16 MiB with ~4 MiB targets.
        steps = max(steps, 2)
        if steps % 2:
            steps += 1
    block_rows = pl.cdiv(rows, steps)
    block_rows = -(-block_rows // sublane) * sublane   # round up to sublane multiple
    block_rows = min(block_rows, rows)                 # full-dim block always legal
    grid = (pl.cdiv(rows, block_rows),)                # ragged last block masked by Pallas

    out2d = pl.pallas_call(
        _quant_kernel,
        out_shape=jax.ShapeDtypeStruct((rows, lanes), orig_dtype),
        grid=grid,
        in_specs=[pl.BlockSpec((block_rows, lanes), lambda i: (i, 0))],
        out_specs=pl.BlockSpec((block_rows, lanes), lambda i: (i, 0)),
        compiler_params=pltpu.CompilerParams(
            dimension_semantics=("parallel",)),
        input_output_aliases=({0: 0} if donate_input else {}),
    )(x2d)

    return out2d.reshape(orig_shape)


if __name__ == "__main__":
    def ref_fn(v):
        vf = jnp.clip(v.astype(jnp.float32), -1.0, 1.0)
        return (jnp.round((vf + 1.0) / 2.0 * 255.0) / 255.0 * 2.0 - 1.0).astype(v.dtype)

    key = jax.random.PRNGKey(0)
    k0, k1, k2 = jax.random.split(key, 3)

    # Primary: NCHW input, batch=2, channels=4, spatial=16x16.
    x = jax.random.normal(k0, (2, 4, 16, 16), dtype=jnp.float32) * 1.5
    y_fast = quantization(x)                          # tiny-input XLA bypass
    y_pallas = quantization(x, min_pallas_bytes=0)    # forced Pallas path
    jax.block_until_ready((y_fast, y_pallas))
    assert y_pallas.shape == x.shape and y_pallas.dtype == x.dtype
    assert jnp.max(jnp.abs(y_fast - ref_fn(x))) < 1e-6
    assert jnp.max(jnp.abs(y_pallas - ref_fn(x))) < 1e-6

    # Ragged-numel path (numel not a multiple of 128) -> single-pass fallback.
    x_odd = jax.random.normal(k1, (3, 3, 7, 5), dtype=jnp.float32) * 1.5
    y_odd = quantization(x_odd)
    jax.block_until_ready(y_odd)
    assert y_odd.shape == x_odd.shape
    assert jnp.max(jnp.abs(y_odd - ref_fn(x_odd))) < 1e-6

    # Medium activation (~2.4 MiB): exercises the tiled Pallas path.
    x_big = jax.random.normal(k2, (3, 8, 160, 160), dtype=jnp.float32) * 1.5
    y_big = quantization(x_big)
    jax.block_until_ready(y_big)
    assert y_big.shape == x_big.shape
    assert jnp.max(jnp.abs(y_big - ref_fn(x_big))) < 1e-6

    print("KERNEL_OK")
</pallas_src>

<mosaic_0001>
module attributes {stable_mosaic.version = 11 : i64} {
  func.func @_quant_kernel(%arg0: i32, %arg1: memref<2x1024xf32, #tpu.memory_space<vmem>>, %arg2: memref<2x1024xf32, #tpu.memory_space<vmem>>) attributes {dimension_semantics = [#tpu.dimension_semantics<parallel>], iteration_bounds = array<i64: 1>, scalar_prefetch = 0 : i64, scratch_operands = 0 : i64, tpu.core_type = #tpu.core_type<tc>, window_params = [{transform_indices = @transform_0, window_bounds = array<i64: 2, 1024>}, {transform_indices = @transform_1, window_bounds = array<i64: 2, 1024>}]} {
    %c0 = arith.constant 0 : index
    %c0_0 = arith.constant 0 : index
    %0 = vector.load %arg1[%c0, %c0_0] : memref<2x1024xf32, #tpu.memory_space<vmem>>, vector<2x1024xf32>
    %cst = arith.constant 1.000000e+00 : f32
    %1 = vector.broadcast %cst : f32 to vector<2x1024xf32>
    %2 = arith.addf %0, %1 : vector<2x1024xf32>
    %cst_1 = arith.constant 1.275000e+02 : f32
    %3 = vector.broadcast %cst_1 : f32 to vector<2x1024xf32>
    %4 = arith.mulf %2, %3 : vector<2x1024xf32>
    %cst_2 = arith.constant 0.000000e+00 : f32
    %cst_3 = arith.constant 2.550000e+02 : f32
    %5 = vector.broadcast %cst_2 : f32 to vector<2x1024xf32>
    %6 = arith.maximumf %5, %4 : vector<2x1024xf32>
    %7 = vector.broadcast %cst_3 : f32 to vector<2x1024xf32>
    %8 = arith.minimumf %7, %6 : vector<2x1024xf32>
    %9 = math.roundeven %8 : vector<2x1024xf32>
    %cst_4 = arith.constant 2.550000e+02 : f32
    %10 = vector.broadcast %cst_4 : f32 to vector<2x1024xf32>
    %11 = arith.divf %9, %10 : vector<2x1024xf32>
    %cst_5 = arith.constant 2.000000e+00 : f32
    %12 = vector.broadcast %cst_5 : f32 to vector<2x1024xf32>
    %13 = arith.mulf %11, %12 : vector<2x1024xf32>
    %cst_6 = arith.constant 1.000000e+00 : f32
    %14 = vector.broadcast %cst_6 : f32 to vector<2x1024xf32>
    %15 = arith.subf %13, %14 : vector<2x1024xf32>
    %c0_7 = arith.constant 0 : index
    %c0_8 = arith.constant 0 : index
    %16 = vector.load %arg2[%c0_7, %c0_8] : memref<2x1024xf32, #tpu.memory_space<vmem>>, vector<2x1024xf32>
    tpu.vector_store %arg2[%c0_7, %c0_8], %15 {strides = array<i32>} : memref<2x1024xf32, #tpu.memory_space<vmem>>, vector<2x1024xf32>,
    return
  }
  func.func @transform_0(%arg0: i32) -> (i32, i32) {
    %c0_i32 = arith.constant 0 : i32
    %c0_i32_0 = arith.constant 0 : i32
    return %arg0, %c0_i32 : i32, i32
  }
  func.func @transform_1(%arg0: i32) -> (i32, i32) {
    %c0_i32 = arith.constant 0 : i32
    %c0_i32_0 = arith.constant 0 : i32
    return %arg0, %c0_i32 : i32, i32
  }
}

</mosaic_0001>

<bundles_post_ra>
// kernel: tpu_custom_call.1
= control target key start
LH: loop header
LB: loop body
LE: loop exit
PB: predicated region body
PF: predicated region fallthrough
CT: control target
= control target key end

     0   :  { %6 = vsyncpa [#allocation3], 0  ;;  %s161_s0 = inlined_call_operand.hbm [shape: f32[2,1024], index: 0, kind: input, shape index: {}]   ;;  %s162_s1 = inlined_call_operand.hbm [shape: f32[2,1024], index: 1, kind: output, shape index: {}]  }
   0x1   :  { %7 = vsyncpa [#allocation4], 0  ;;  %s13_s8 = sshll.u32 %s161_s0, 4  ;;  %s142_s9 = smov [#allocation2]   ;;  %s14_s8 = int_to_ptr.hbm [resolvable:$true] %s13_s8 }
   0x2   :  { %s15_s10 = sshll.u32 %s142_s9, 4  ;;  %s16_s10 = int_to_ptr.vmem [resolvable:$true] %s15_s10 }
   0x3   :  { %18 = dma.hbm_to_vmem [thread:$0]  %s14_s8, 256, %s16_s10, [#allocation3]  }
   0x4   :  { %138 = dma.done.wait [#allocation3], 256  }
   0x5   :  { %139 = vsyncadd [#allocation3], 4294967040  ;;  %v143_v0 = vmov 255.0   ;;  %v23_v2 = vld [vmem:[#allocation2] sm:$0xff]  ;;  %v24_v3 = vld [vmem:[#allocation2 + $0x8] sm:$0xff]  ;;  %s144_s0 = smov [#allocation5]  }
   0x6   :  { %88 = vrcp.f32 %v143_v0  ;;  %v25_v4 = vadd.f32 1.0, %v23_v2  ;;  %v26_v6 = vadd.f32 1.0, %v24_v3  ;;  %s55_s11 = sshll.u32 %s144_s0, 4  ;;  %s57_s14 = sshll.u32 %s162_s1, 4  ;;  %s56_s11 = int_to_ptr.vmem [resolvable:$true] %s55_s11  ;;  %s58_s14 = int_to_ptr.hbm [resolvable:$true] %s57_s14 }
   0x8   :  { %v27_v7 = vmul.f32 127.5, %v25_v4  ;;  %v28_v9 = vmul.f32 127.5, %v26_v6 }
   0xa   :  { %v29_v10 = vmax.f32 %v27_v7, 0.0  ;;  %v30_v11 = vmax.f32 %v28_v9, 0.0 }
   0xc   :  { %v89_v1 = vpop.eup %88  ;;  %v31_v12 = vmin.f32 %v29_v10, 255.0  ;;  %v32_v14 = vmin.f32 %v30_v11, 255.0 }
   0xd   :  { %v36_v5 = vmul.f32 255.0, %v89_v1  ;;  %vm40_vm0 = vweird.f32 %v89_v1 }
   0xe   :  { %v71_v15 = vcvt.f32.s32 %v31_v12  ;;  %v69_v16 = vand.u32 2147483647, %v31_v12  ;;  %v79_v17 = vcvt.f32.s32 %v32_v14  ;;  %v74_v19 = vand.u32 2147483648, %v31_v12 }
   0xf   :  { %v37_v8 = vsub.f32 1.0, %v36_v5  ;;  %v77_v21 = vand.u32 2147483647, %v32_v14  ;;  %v82_v23 = vand.u32 2147483648, %v32_v14 }
  0x10   :  { %v72_v18 = vcvt.s32.f32 %v71_v15  ;;  %v80_v22 = vcvt.s32.f32 %v79_v17  ;;  %vm70_vm1 = vcmp.lt.f32.partialorder %v69_v16, 8388608.0 }
  0x11   :  { %v38_v13 = vmul.f32 %v89_v1, %v37_v8  ;;  %vm78_vm2 = vcmp.lt.f32.partialorder %v77_v21, 8388608.0 }
  0x12   :  { %v73_v24 = vand.u32 2147483647, %v72_v18  ;;  %v81_v25 = vand.u32 2147483647, %v80_v22 }
  0x13   :  { %v39_v20 = vadd.f32 %v89_v1, %v38_v13 }
  0x14   :  { %v75_v26 = vor.u32 %v74_v19, %v73_v24  ;;  %v83_v28 = vor.u32 %v82_v23, %v81_v25 }
  0x15   :  { %v41_v27 = vsel %vm40_vm0, %v89_v1, %v39_v20 }
  0x16   :  { %v76_v29 = vsel %vm70_vm1, %v75_v26, %v31_v12  ;;  %v84_v31 = vsel %vm78_vm2, %v83_v28, %v32_v14 }
  0x17   :  { %v42_v30 = vmul.f32 %v76_v29, %v41_v27  ;;  %v43_v32 = vmul.f32 %v84_v31, %v41_v27 }
  0x19   :  { %v44_v33 = vmul.f32 2.0, %v42_v30  ;;  %v45_v34 = vmul.f32 2.0, %v43_v32 }
  0x1b   :  { %v67_v35 = vadd.f32 -1.0, %v44_v33  ;;  %v68_v36 = vadd.f32 -1.0, %v45_v34 }
  0x1d   :  { %48 = vst [vmem:[#allocation5] sm:$0xff] %v67_v35 }
  0x1e   :  { %49 = vst [vmem:[#allocation5 + $0x8] sm:$0xff] %v68_v36 }
  0x1f   :  { %60 = dma.vmem_to_hbm [thread:$0]  %s56_s11, 256, %s58_s14, [#allocation4]  }
  0x20   :  { %140 = dma.done.wait [#allocation4], 256  }
  0x21   :  { %141 = vsyncadd [#allocation4], 4294967040 }
  0x22   :  { %65 = vsyncpa [#allocation3], 1 }
  0x23   :  { %66 = vsyncpa [#allocation4], 1 }

</bundles_post_ra>
